<compile_context>
chip_gen: v5e
topology: v5e:2x2
jax: 0.10.0
libtpu: 0.0.40
codegen_flags: <defaults>
</compile_context>

<pallas_src>
import functools

import numpy as np
import jax
import jax.numpy as jnp
from jax import lax
from jax.experimental import pallas as pl
from jax.experimental.pallas import tpu as pltpu


def _flash_attn_kernel(xq_ref, xkv_ref, wq_ref, bq_ref, wkv_ref, bkv_ref,
                       o_ref, q_scr, m_scr, l_scr, acc_scr, *, scale, hp):
    """One grid step = (batch b, query block qi, kv block ki)."""
    ki = pl.program_id(2)
    mxu_dtype = q_scr.dtype  # bf16 or f32; MXU operands use this dtype

    @pl.when(ki == 0)
    def _init():
        # Project Q once per (b, qi); fold 1/sqrt(d_k) into Q so the scale is
        # applied over (tq, Hp) instead of every (tq, tk) scores tile.
        q = (jnp.dot(xq_ref[...], wq_ref[...],
                     preferred_element_type=jnp.float32) + bq_ref[...])
        q_scr[...] = (q * scale).astype(mxu_dtype)
        m_scr[...] = jnp.full(m_scr.shape, -jnp.inf, dtype=m_scr.dtype)
        l_scr[...] = jnp.zeros(l_scr.shape, dtype=l_scr.dtype)
        acc_scr[...] = jnp.zeros(acc_scr.shape, dtype=acc_scr.dtype)

    # Fused K/V projection for this kv tile: one MXU matmul with shared LHS,
    # f32 accumulation, then a lane-aligned split at column Hp.
    kv = (jnp.dot(xkv_ref[...], wkv_ref[...],
                  preferred_element_type=jnp.float32) + bkv_ref[...])
    k = kv[:, :hp]
    v = kv[:, hp:]

    # scores = Q K^T via a transposed-RHS contraction (no explicit transpose).
    s = lax.dot_general(
        q_scr[...], k.astype(mxu_dtype),
        dimension_numbers=(((1,), (1,)), ((), ())),
        preferred_element_type=jnp.float32)                       # (tq, tk)

    # Online (flash) softmax update -- elementwise math kept in f32.
    m_prev = m_scr[...]
    m_new = jnp.maximum(m_prev, jnp.max(s, axis=-1, keepdims=True))
    alpha = jnp.exp(m_prev - m_new)
    p = jnp.exp(s - m_new)
    l_scr[...] = alpha * l_scr[...] + jnp.sum(p, axis=-1, keepdims=True)
    acc_scr[...] = alpha * acc_scr[...] + jnp.dot(
        p.astype(mxu_dtype), v.astype(mxu_dtype),
        preferred_element_type=jnp.float32)
    m_scr[...] = m_new

    @pl.when(ki == pl.num_programs(2) - 1)
    def _finalize():
        inv_l = pl.reciprocal(l_scr[...], approx=True)   # EUP slot, ~free
        o_ref[...] = (acc_scr[...] * inv_l).astype(o_ref.dtype)


def _pick_tile(s, target):
    """Largest tile <= target that is a multiple of 8 and divides s (else s)."""
    if s <= target:
        return s
    t = (target // 8) * 8
    while t >= 8:
        if s % t == 0:
            return t
        t -= 8
    return s


def self_attention_pallas(x, wq, bq, wk, bk, wv, bv, *,
                          mxu_dtype=None, tq_target=256, tk_target=512):
    """x: (B, S, D); wq/wk/wv: (D, H); bq/bk/bv: (H,) or (1, H) -> (B, S, H)."""
    B, S, D = x.shape
    H = wq.shape[-1]
    out_dtype = x.dtype
    if mxu_dtype is None:
        mxu_dtype = x.dtype
    mxu_dtype = jax.dtypes.canonicalize_dtype(mxu_dtype)

    bq = jnp.reshape(bq, (1, -1))
    bk = jnp.reshape(bk, (1, -1))
    bv = jnp.reshape(bv, (1, -1))

    # Lane-dense head dim: zero-pad H up to a multiple of 128 so the MXU N dim
    # and the output store path are full-lane. Padded Q/K/V columns are exactly
    # zero -> scores and outputs unchanged; padding is sliced off below.
    Hp = ((H + 127) // 128) * 128
    if Hp != H:
        pad = [(0, 0), (0, Hp - H)]
        wq, wk, wv = (jnp.pad(w, pad) for w in (wq, wk, wv))
        bq, bk, bv = (jnp.pad(b, pad) for b in (bq, bk, bv))

    # Fuse K and V projections: one (D, 2*Hp) weight, one (1, 2*Hp) bias.
    wkv = jnp.concatenate([wk, wv], axis=-1)
    bkv = jnp.concatenate([bk, bv], axis=-1)

    # MXU operands in mxu_dtype (bf16 halves DMA + doubles MXU throughput);
    # biases stay f32 (added after f32 accumulation), softmax math stays f32.
    x_c = x.astype(mxu_dtype)
    wq = wq.astype(mxu_dtype)
    wkv = wkv.astype(mxu_dtype)
    bq = bq.astype(jnp.float32)
    bkv = bkv.astype(jnp.float32)

    # Tile sizes chosen so the resident footprint (double-buffered x tiles,
    # resident weights, q/m/l/acc scratch) stays well under the v7x 64 MiB VMEM.
    tq = _pick_tile(S, tq_target)
    tk = _pick_tile(S, tk_target)
    grid = (B, S // tq, S // tk)

    in_specs = [
        pl.BlockSpec((None, tq, D), lambda b, qi, ki: (b, qi, 0)),  # x (Q rows)
        pl.BlockSpec((None, tk, D), lambda b, qi, ki: (b, ki, 0)),  # x (K/V rows)
        pl.BlockSpec((D, Hp), lambda b, qi, ki: (0, 0)),            # Wq
        pl.BlockSpec((1, Hp), lambda b, qi, ki: (0, 0)),            # bq
        pl.BlockSpec((D, 2 * Hp), lambda b, qi, ki: (0, 0)),        # [Wk|Wv]
        pl.BlockSpec((1, 2 * Hp), lambda b, qi, ki: (0, 0)),        # [bk|bv]
    ]
    out_specs = pl.BlockSpec((None, tq, Hp), lambda b, qi, ki: (b, qi, 0))

    scratch_shapes = [
        pltpu.VMEM((tq, Hp), mxu_dtype),    # scaled Q tile
        pltpu.VMEM((tq, 1), jnp.float32),   # running max  m
        pltpu.VMEM((tq, 1), jnp.float32),   # running sum  l
        pltpu.VMEM((tq, Hp), jnp.float32),  # output accumulator
    ]

    kernel = functools.partial(_flash_attn_kernel,
                               scale=float(1.0 / np.sqrt(H)), hp=Hp)

    out = pl.pallas_call(
        kernel,
        out_shape=jax.ShapeDtypeStruct((B, S, Hp), out_dtype),
        grid_spec=pltpu.PrefetchScalarGridSpec(
            num_scalar_prefetch=0,
            grid=grid,
            in_specs=in_specs,
            out_specs=out_specs,
            scratch_shapes=scratch_shapes),
        compiler_params=pltpu.CompilerParams(
            dimension_semantics=("parallel", "parallel", "arbitrary"),
            vmem_limit_bytes=48 * 1024 * 1024),
    )(x_c, x_c, wq, bq, wkv, bkv)

    return out[..., :H] if Hp != H else out


def self_attention_ref(x, wq, bq, wk, bk, wv, bv):
    q = x @ wq + jnp.reshape(bq, (1, -1))
    k = x @ wk + jnp.reshape(bk, (1, -1))
    v = x @ wv + jnp.reshape(bv, (1, -1))
    s = jnp.einsum("bqd,bkd->bqk", q, k) / jnp.sqrt(jnp.float32(wq.shape[-1]))
    p = jax.nn.softmax(s, axis=-1)
    return jnp.einsum("bqk,bkd->bqd", p, v)


if __name__ == "__main__":
    # Shapes implied by the module: (B, S, input_dim) -> (B, S, hidden_dim)
    B, S, D_IN, HIDDEN = 2, 8, 16, 32

    key = jax.random.PRNGKey(0)
    kx, kq, kbq, kk, kbk, kv, kbv = jax.random.split(key, 7)

    # nn.Linear(input_dim, hidden_dim): weight (H, D_in), bias (H,), init
    # uniform(-1/sqrt(D_in), 1/sqrt(D_in)); pre-transpose weight to (D_in, H).
    bound = 1.0 / np.sqrt(D_IN)

    def lin_params(kw, kb):
        w = jax.random.uniform(kw, (HIDDEN, D_IN), jnp.float32, -bound, bound)
        b = jax.random.uniform(kb, (HIDDEN,), jnp.float32, -bound, bound)
        return w.T, b

    wq, bq = lin_params(kq, kbq)
    wk, bk = lin_params(kk, kbk)
    wv, bv = lin_params(kv, kbv)

    # --- small demo shape (single q/kv block) -------------------------------
    x = jax.random.normal(kx, (B, S, D_IN), dtype=jnp.float32)
    out = jax.block_until_ready(self_attention_pallas(x, wq, bq, wk, bk, wv, bv))
    ref = self_attention_ref(x, wq, bq, wk, bk, wv, bv)
    assert out.shape == (B, S, HIDDEN)
    assert np.allclose(np.asarray(out), np.asarray(ref), atol=5e-3, rtol=5e-3)

    # --- multi-block flash path: exercises online softmax across kv tiles ---
    S2 = 128
    x2 = jax.random.normal(kx, (B, S2, D_IN), dtype=jnp.float32)
    out2 = jax.block_until_ready(
        self_attention_pallas(x2, wq, bq, wk, bk, wv, bv,
                              tq_target=64, tk_target=32))
    ref2 = self_attention_ref(x2, wq, bq, wk, bk, wv, bv)
    assert np.allclose(np.asarray(out2), np.asarray(ref2), atol=5e-3, rtol=5e-3)

    # --- bf16 MXU operands, f32 accumulation + f32 softmax ------------------
    out3 = jax.block_until_ready(
        self_attention_pallas(x2, wq, bq, wk, bk, wv, bv,
                              mxu_dtype=jnp.bfloat16,
                              tq_target=64, tk_target=32))
    assert np.allclose(np.asarray(out3), np.asarray(ref2), atol=5e-2, rtol=5e-2)

    print("KERNEL_OK")
</pallas_src>

<mosaic_0001>
module attributes {stable_mosaic.version = 11 : i64} {
  func.func @_flash_attn_kernel(%arg0: i32, %arg1: i32, %arg2: i32, %arg3: memref<1x8x16xf32, #tpu.memory_space<vmem>>, %arg4: memref<1x8x16xf32, #tpu.memory_space<vmem>>, %arg5: memref<16x128xf32, #tpu.memory_space<vmem>>, %arg6: memref<1x128xf32, #tpu.memory_space<vmem>>, %arg7: memref<16x256xf32, #tpu.memory_space<vmem>>, %arg8: memref<1x256xf32, #tpu.memory_space<vmem>>, %arg9: memref<1x8x128xf32, #tpu.memory_space<vmem>>, %arg10: memref<8x128xf32, #tpu.memory_space<vmem>>, %arg11: memref<8x1xf32, #tpu.memory_space<vmem>>, %arg12: memref<8x1xf32, #tpu.memory_space<vmem>>, %arg13: memref<8x128xf32, #tpu.memory_space<vmem>>) attributes {dimension_semantics = [#tpu.dimension_semantics<parallel>, #tpu.dimension_semantics<parallel>, #tpu.dimension_semantics<arbitrary>], iteration_bounds = array<i64: 2, 1, 1>, scalar_prefetch = 0 : i64, scratch_operands = 4 : i64, tpu.core_type = #tpu.core_type<tc>, window_params = [{transform_indices = @transform_0, window_bounds = array<i64: 1, 8, 16>}, {transform_indices = @transform_1, window_bounds = array<i64: 1, 8, 16>}, {pipeline_mode = #tpu.pipeline_mode<synchronous>, transform_indices = @transform_2, window_bounds = array<i64: 16, 128>}, {pipeline_mode = #tpu.pipeline_mode<synchronous>, transform_indices = @transform_3, window_bounds = array<i64: 1, 128>}, {pipeline_mode = #tpu.pipeline_mode<synchronous>, transform_indices = @transform_4, window_bounds = array<i64: 16, 256>}, {pipeline_mode = #tpu.pipeline_mode<synchronous>, transform_indices = @transform_5, window_bounds = array<i64: 1, 256>}, {transform_indices = @transform_6, window_bounds = array<i64: 1, 8, 128>}]} {
    %c0_i32 = arith.constant 0 : i32
    %0 = arith.cmpi eq, %arg2, %c0_i32 : i32
    %1 = arith.extui %0 : i1 to i32
    %c0_i32_0 = arith.constant 0 : i32
    %2 = arith.cmpi ne, %1, %c0_i32_0 : i32
    scf.if %2 {
      %c0_27 = arith.constant 0 : index
      %c0_28 = arith.constant 0 : index
      %c0_29 = arith.constant 0 : index
      %39 = vector.load %arg3[%c0_27, %c0_28, %c0_29] : memref<1x8x16xf32, #tpu.memory_space<vmem>>, vector<1x8x16xf32>
      %40 = vector.shape_cast %39 : vector<1x8x16xf32> to vector<8x16xf32>
      %c0_30 = arith.constant 0 : index
      %c0_31 = arith.constant 0 : index
      %41 = vector.load %arg5[%c0_30, %c0_31] : memref<16x128xf32, #tpu.memory_space<vmem>>, vector<16x128xf32>
      %cst_32 = arith.constant dense<0.000000e+00> : vector<8x128xf32>
      %42 = tpu.matmul %40, %41, %cst_32 {dimension_numbers = #tpu.dot_dimension_numbers<[1], [0], [0], [1], [0, 0, 1, 1], [], []>} : vector<8x16xf32>, vector<16x128xf32>, vector<8x128xf32> -> vector<8x128xf32>
      %c0_33 = arith.constant 0 : index
      %c0_34 = arith.constant 0 : index
      %43 = vector.load %arg6[%c0_33, %c0_34] : memref<1x128xf32, #tpu.memory_space<vmem>>, vector<1x128xf32>
      %44 = vector.broadcast %43 : vector<1x128xf32> to vector<8x128xf32>
      %45 = arith.addf %42, %44 : vector<8x128xf32>
      %cst_35 = arith.constant 0.176776692 : f32
      %46 = vector.broadcast %cst_35 : f32 to vector<8x128xf32>
      %47 = arith.mulf %45, %46 : vector<8x128xf32>
      %c0_36 = arith.constant 0 : index
      %c0_37 = arith.constant 0 : index
      %48 = vector.load %arg10[%c0_36, %c0_37] : memref<8x128xf32, #tpu.memory_space<vmem>>, vector<8x128xf32>
      tpu.vector_store %arg10[%c0_36, %c0_37], %47 {strides = array<i32>} : memref<8x128xf32, #tpu.memory_space<vmem>>, vector<8x128xf32>,
      %cst_38 = arith.constant 0xFF800000 : f32
      %49 = vector.broadcast %cst_38 : f32 to vector<8x1xf32>
      %c0_39 = arith.constant 0 : index
      %c0_40 = arith.constant 0 : index
      %50 = vector.load %arg11[%c0_39, %c0_40] : memref<8x1xf32, #tpu.memory_space<vmem>>, vector<8x1xf32>
      tpu.vector_store %arg11[%c0_39, %c0_40], %49 {strides = array<i32>} : memref<8x1xf32, #tpu.memory_space<vmem>>, vector<8x1xf32>,
      %cst_41 = arith.constant 0.000000e+00 : f32
      %51 = vector.broadcast %cst_41 : f32 to vector<8x1xf32>
      %c0_42 = arith.constant 0 : index
      %c0_43 = arith.constant 0 : index
      %52 = vector.load %arg12[%c0_42, %c0_43] : memref<8x1xf32, #tpu.memory_space<vmem>>, vector<8x1xf32>
      tpu.vector_store %arg12[%c0_42, %c0_43], %51 {strides = array<i32>} : memref<8x1xf32, #tpu.memory_space<vmem>>, vector<8x1xf32>,
      %cst_44 = arith.constant 0.000000e+00 : f32
      %53 = vector.broadcast %cst_44 : f32 to vector<8x128xf32>
      %c0_45 = arith.constant 0 : index
      %c0_46 = arith.constant 0 : index
      %54 = vector.load %arg13[%c0_45, %c0_46] : memref<8x128xf32, #tpu.memory_space<vmem>>, vector<8x128xf32>
      tpu.vector_store %arg13[%c0_45, %c0_46], %53 {strides = array<i32>} : memref<8x128xf32, #tpu.memory_space<vmem>>, vector<8x128xf32>,
    } else {
    }
    %c0 = arith.constant 0 : index
    %c0_1 = arith.constant 0 : index
    %c0_2 = arith.constant 0 : index
    %3 = vector.load %arg4[%c0, %c0_1, %c0_2] : memref<1x8x16xf32, #tpu.memory_space<vmem>>, vector<1x8x16xf32>
    %4 = vector.shape_cast %3 : vector<1x8x16xf32> to vector<8x16xf32>
    %c0_3 = arith.constant 0 : index
    %c0_4 = arith.constant 0 : index
    %5 = vector.load %arg7[%c0_3, %c0_4] : memref<16x256xf32, #tpu.memory_space<vmem>>, vector<16x256xf32>
    %cst = arith.constant dense<0.000000e+00> : vector<8x256xf32>
    %6 = tpu.matmul %4, %5, %cst {dimension_numbers = #tpu.dot_dimension_numbers<[1], [0], [0], [1], [0, 0, 1, 1], [], []>} : vector<8x16xf32>, vector<16x256xf32>, vector<8x256xf32> -> vector<8x256xf32>
    %c0_5 = arith.constant 0 : index
    %c0_6 = arith.constant 0 : index
    %7 = vector.load %arg8[%c0_5, %c0_6] : memref<1x256xf32, #tpu.memory_space<vmem>>, vector<1x256xf32>
    %8 = vector.broadcast %7 : vector<1x256xf32> to vector<8x256xf32>
    %9 = arith.addf %6, %8 : vector<8x256xf32>
    %10 = vector.extract_strided_slice %9 {offsets = [0, 0], sizes = [8, 128], strides = [1, 1]} : vector<8x256xf32> to vector<8x128xf32>
    %11 = vector.extract_strided_slice %9 {offsets = [0, 128], sizes = [8, 128], strides = [1, 1]} : vector<8x256xf32> to vector<8x128xf32>
    %c0_7 = arith.constant 0 : index
    %c0_8 = arith.constant 0 : index
    %12 = vector.load %arg10[%c0_7, %c0_8] : memref<8x128xf32, #tpu.memory_space<vmem>>, vector<8x128xf32>
    %cst_9 = arith.constant dense<0.000000e+00> : vector<8x8xf32>
    %13 = tpu.matmul %12, %10, %cst_9 {dimension_numbers = #tpu.dot_dimension_numbers<[1], [1], [0], [0], [0, 0, 1, 0], [], []>} : vector<8x128xf32>, vector<8x128xf32>, vector<8x8xf32> -> vector<8x8xf32>
    %c0_10 = arith.constant 0 : index
    %c0_11 = arith.constant 0 : index
    %14 = vector.load %arg11[%c0_10, %c0_11] : memref<8x1xf32, #tpu.memory_space<vmem>>, vector<8x1xf32>
    %cst_12 = arith.constant dense<0xFF800000> : vector<8xf32>
    %15 = vector.multi_reduction <maximumf>, %13, %cst_12 [1] : vector<8x8xf32> to vector<8xf32>
    %16 = vector.shape_cast %15 : vector<8xf32> to vector<8x1xf32>
    %17 = arith.maximumf %14, %16 : vector<8x1xf32>
    %18 = arith.subf %14, %17 : vector<8x1xf32>
    %19 = math.exp %18 : vector<8x1xf32>
    %20 = vector.broadcast %17 : vector<8x1xf32> to vector<8x8xf32>
    %21 = arith.subf %13, %20 : vector<8x8xf32>
    %22 = math.exp %21 : vector<8x8xf32>
    %c0_13 = arith.constant 0 : index
    %c0_14 = arith.constant 0 : index
    %23 = vector.load %arg12[%c0_13, %c0_14] : memref<8x1xf32, #tpu.memory_space<vmem>>, vector<8x1xf32>
    %24 = arith.mulf %19, %23 : vector<8x1xf32>
    %cst_15 = arith.constant dense<0.000000e+00> : vector<8xf32>
    %25 = vector.multi_reduction <add>, %22, %cst_15 [1] : vector<8x8xf32> to vector<8xf32>
    %26 = vector.shape_cast %25 : vector<8xf32> to vector<8x1xf32>
    %27 = arith.addf %24, %26 : vector<8x1xf32>
    %c0_16 = arith.constant 0 : index
    %c0_17 = arith.constant 0 : index
    %28 = vector.load %arg12[%c0_16, %c0_17] : memref<8x1xf32, #tpu.memory_space<vmem>>, vector<8x1xf32>
    tpu.vector_store %arg12[%c0_16, %c0_17], %27 {strides = array<i32>} : memref<8x1xf32, #tpu.memory_space<vmem>>, vector<8x1xf32>,
    %c0_18 = arith.constant 0 : index
    %c0_19 = arith.constant 0 : index
    %29 = vector.load %arg13[%c0_18, %c0_19] : memref<8x128xf32, #tpu.memory_space<vmem>>, vector<8x128xf32>
    %30 = vector.broadcast %19 : vector<8x1xf32> to vector<8x128xf32>
    %31 = arith.mulf %30, %29 : vector<8x128xf32>
    %cst_20 = arith.constant dense<0.000000e+00> : vector<8x128xf32>
    %32 = tpu.matmul %22, %11, %cst_20 {dimension_numbers = #tpu.dot_dimension_numbers<[1], [0], [0], [1], [0, 0, 1, 1], [], []>} : vector<8x8xf32>, vector<8x128xf32>, vector<8x128xf32> -> vector<8x128xf32>
    %33 = arith.addf %31, %32 : vector<8x128xf32>
    %c0_21 = arith.constant 0 : index
    %c0_22 = arith.constant 0 : index
    %34 = vector.load %arg13[%c0_21, %c0_22] : memref<8x128xf32, #tpu.memory_space<vmem>>, vector<8x128xf32>
    tpu.vector_store %arg13[%c0_21, %c0_22], %33 {strides = array<i32>} : memref<8x128xf32, #tpu.memory_space<vmem>>, vector<8x128xf32>,
    %c0_23 = arith.constant 0 : index
    %c0_24 = arith.constant 0 : index
    %35 = vector.load %arg11[%c0_23, %c0_24] : memref<8x1xf32, #tpu.memory_space<vmem>>, vector<8x1xf32>
    tpu.vector_store %arg11[%c0_23, %c0_24], %17 {strides = array<i32>} : memref<8x1xf32, #tpu.memory_space<vmem>>, vector<8x1xf32>,
    %c0_i32_25 = arith.constant 0 : i32
    %36 = arith.cmpi eq, %arg2, %c0_i32_25 : i32
    %37 = arith.extui %36 : i1 to i32
    %c0_i32_26 = arith.constant 0 : i32
    %38 = arith.cmpi ne, %37, %c0_i32_26 : i32
    scf.if %38 {
      %c0_27 = arith.constant 0 : index
      %c0_28 = arith.constant 0 : index
      %39 = vector.load %arg12[%c0_27, %c0_28] : memref<8x1xf32, #tpu.memory_space<vmem>>, vector<8x1xf32>
      %40 = tpu.reciprocal %39 {approx = true} : vector<8x1xf32> -> vector<8x1xf32>
      %c0_29 = arith.constant 0 : index
      %c0_30 = arith.constant 0 : index
      %41 = vector.load %arg13[%c0_29, %c0_30] : memref<8x128xf32, #tpu.memory_space<vmem>>, vector<8x128xf32>
      %42 = vector.broadcast %40 : vector<8x1xf32> to vector<8x128xf32>
      %43 = arith.mulf %41, %42 : vector<8x128xf32>
      %c0_31 = arith.constant 0 : index
      %c0_32 = arith.constant 0 : index
      %c0_33 = arith.constant 0 : index
      %44 = vector.load %arg9[%c0_31, %c0_32, %c0_33] : memref<1x8x128xf32, #tpu.memory_space<vmem>>, vector<1x8x128xf32>
      %45 = vector.shape_cast %44 : vector<1x8x128xf32> to vector<8x128xf32>
      %46 = vector.shape_cast %43 : vector<8x128xf32> to vector<1x8x128xf32>
      tpu.vector_store %arg9[%c0_31, %c0_32, %c0_33], %46 {strides = array<i32>} : memref<1x8x128xf32, #tpu.memory_space<vmem>>, vector<1x8x128xf32>,
    } else {
    }
    return
  }
  func.func @transform_0(%arg0: i32, %arg1: i32, %arg2: i32) -> (i32, i32, i32) {
    %c0_i32 = arith.constant 0 : i32
    %c0_i32_0 = arith.constant 0 : i32
    return %arg0, %arg1, %c0_i32 : i32, i32, i32
  }
  func.func @transform_1(%arg0: i32, %arg1: i32, %arg2: i32) -> (i32, i32, i32) {
    %c0_i32 = arith.constant 0 : i32
    %c0_i32_0 = arith.constant 0 : i32
    return %arg0, %arg2, %c0_i32 : i32, i32, i32
  }
  func.func @transform_2(%arg0: i32, %arg1: i32, %arg2: i32) -> (i32, i32) {
    %c0_i32 = arith.constant 0 : i32
    %c0_i32_0 = arith.constant 0 : i32
    %c0_i32_1 = arith.constant 0 : i32
    return %c0_i32, %c0_i32_0 : i32, i32
  }
  func.func @transform_3(%arg0: i32, %arg1: i32, %arg2: i32) -> (i32, i32) {
    %c0_i32 = arith.constant 0 : i32
    %c0_i32_0 = arith.constant 0 : i32
    %c0_i32_1 = arith.constant 0 : i32
    return %c0_i32, %c0_i32_0 : i32, i32
  }
  func.func @transform_4(%arg0: i32, %arg1: i32, %arg2: i32) -> (i32, i32) {
    %c0_i32 = arith.constant 0 : i32
    %c0_i32_0 = arith.constant 0 : i32
    %c0_i32_1 = arith.constant 0 : i32
    return %c0_i32, %c0_i32_0 : i32, i32
  }
  func.func @transform_5(%arg0: i32, %arg1: i32, %arg2: i32) -> (i32, i32) {
    %c0_i32 = arith.constant 0 : i32
    %c0_i32_0 = arith.constant 0 : i32
    %c0_i32_1 = arith.constant 0 : i32
    return %c0_i32, %c0_i32_0 : i32, i32
  }
  func.func @transform_6(%arg0: i32, %arg1: i32, %arg2: i32) -> (i32, i32, i32) {
    %c0_i32 = arith.constant 0 : i32
    %c0_i32_0 = arith.constant 0 : i32
    return %arg0, %arg1, %c0_i32 : i32, i32, i32
  }
}

</mosaic_0001>

<bundles_post_ra>
// kernel: tpu_custom_call.1
= control target key start
LH: loop header
LB: loop body
LE: loop exit
PB: predicated region body
PF: predicated region fallthrough
CT: control target
= control target key end

     0   :  { %s1268_s0 = inlined_call_operand.hbm [shape: f32[2,8,16], index: 0, kind: input, shape index: {}]   ;;  %s1269_s1 = inlined_call_operand.hbm [shape: f32[2,8,16], index: 1, kind: input, shape index: {}]   ;;  %s1270_s2 = inlined_call_operand.hbm [shape: f32[16,128], index: 2, kind: input, shape index: {}]   ;;  %s1271_s3 = inlined_call_operand.vmem [shape: f32[1,128], index: 3, kind: input, shape index: {}]   ;;  %s1272_s4 = inlined_call_operand.hbm [shape: f32[16,256], index: 4, kind: input, shape index: {}]   ;;  %s1273_s5 = inlined_call_operand.vmem [shape: f32[1,256], index: 5, kind: input, shape index: {}]   ;;  %s1274_s6 = inlined_call_operand.hbm [shape: f32[2,8,128], index: 6, kind: output, shape index: {}]  }
   0x1   :  { %1279 = sst [smem:[#allocation25_spill]] %s1270_s2 }
   0x2   :  { %1280 = sst [smem:[#allocation26_spill]] %s1272_s4 }
   0x3   :  { %11 = vsyncpa [#allocation7], 0 }
   0x4   :  { %13 = vsyncpa [#allocation7 + $0x1], 0 }
   0x5   :  { %14 = vsyncpa [#allocation10], 0 }
   0x6   :  { %16 = vsyncpa [#allocation10 + $0x1], 0 }
   0x7   :  { %17 = vsyncpa [#allocation13], 0 }
   0x8   :  { %18 = vsyncpa [#allocation8], 0 }
   0x9   :  { %20 = vsyncpa [#allocation8 + $0x1], 0  ;;  %s1088_s21 = smov 0   ;;  %s1090_s22 = smov 0  }
   0xa   :  { %s1092_s23 = smov 0   ;;  %s1094_s24 = smov 0  }
   0xb   :  { %s1096_s25 = smov 0   ;;  %s1098_s26 = smov 0  }
   0xc LB: > { %1281 = sst [smem:[#allocation20_spill]] %s1030_s23  ;;  %s1119_s27 = sadd.s32 4294967295, %s1042_s26   ;;  %s1042_s26 = sphi %s1098_s26, %s26_s26   ;;  %s1038_s25 = sphi %s1096_s25, %s1297_s25   ;;  %s1034_s24 = sphi %s1094_s24, %s1296_s24   ;;  %s1030_s23 = sphi %s1092_s23, %s1295_s23   ;;  %s1026_s22 = sphi %s1090_s22, %s1299_s22   ;;  %s1022_s21 = sphi %s1088_s21, %s1298_s21  }
   0xd   : > { %1282 = sst [smem:[#allocation21_spill]] %s1038_s25  ;;  %p701_p0 = scmp.ge.s32.totalorder %s1042_s26, 1 }
   0xe   : > { %p68_p1 = scmp.eq.s32.totalorder %s1119_s27, 0  ;;  %p218_p2 = scmp.lt.s32.totalorder %s1042_s26, 3 }
   0xf   : > { %s1283_s2 = sld [smem:[#allocation25_spill]]  ;;  %s1044_s8 = smov [#allocation11]  }
  0x10   : > { %p1127_p3 = pnand %p701_p0, %p218_p2  ;;  %s231_s9 = sshll.u32 %s1044_s8, 4  ;;  %s232_s9 = int_to_ptr.vmem [resolvable:$true] %s231_s9 }
  0x11   : > { %p704_p6 = scmp.ge.s32.totalorder %s1042_s26, 2  ;;  %s1285_s4 = sld [smem:[#allocation26_spill]] }
  0x12   : > { %p737_p4 = pneg %p1127_p3  ;;  %s1045_s13 = smov 128  }
  0x13   : > { %s1046_s14 = smov 8   ;;  %s1047_s15 = smov [#allocation12]  }
  0x14   : > { %p738_p5 = pnand %p737_p4, %p68_p1  ;;  %s248_s16 = sshll.u32 %s1047_s15, 4  ;;  %s249_s16 = int_to_ptr.vmem [resolvable:$true] %s248_s16 }
  0x15   : > { %s229_s30 = sshll.u32 %s1283_s2, 4  ;;  %s1048_s17 = smov 256   ;;  %s230_s30 = int_to_ptr.hbm [resolvable:$true] %s229_s30 }
  0x16   : > { %740 = dma.hbm_to_vmem [thread:$0]  (!%p738_p5), %s230_s30, 256, %s232_s9, [#allocation10], %s1045_s13, %s1045_s13, %s1046_s14  }
  0x17   : > { %s246_s12 = sshll.u32 %s1285_s4, 4  ;;  %s1049_s18 = smov 16   ;;  %s247_s12 = int_to_ptr.hbm [resolvable:$true] %s246_s12 }
  0x18   : > { %743 = dma.hbm_to_vmem [thread:$0]  (!%p738_p5), %s247_s12, 512, %s249_s16, [#allocation13], %s1048_s17, %s1048_s17, %s1049_s18  }
  0x19   : > { %s700_s19 = sadd.s32 4294967294, %s1042_s26   ;;  %s45_s20 = sadd.s32 1, %s1038_s25 }
  0x1a   : > { %p47_p7 = scmp.ge.s32.totalorder %s45_s20, 2  ;;  %s54_s28 = sadd.s32 1, %s1030_s23 }
  0x1b   : > { %p61_p8 = scmp.ne.s32.totalorder %s1030_s23, %s1026_s22  ;;  %p62_p9 = scmp.eq.s32.totalorder %s1042_s26, 0 }
  0x1c   : > { %s1301_s20 = smov (%p47_p7, %s45_s20), 0  ;;  %p67_p11 = scmp.ne.s32.totalorder %s1026_s22, %s1022_s21 }
  0x1d   : > { %1286 = sst [smem:[#allocation22_spill]] %s1301_s20  ;;  %p1147_p10 = por %p62_p9, %p61_p8 }
  0x1e   : > { %s49_s30 = ssub.s32 %s1038_s25, %s1301_s20  ;;  %p205_p12 = scmp.eq.s32.totalorder %s1119_s27, 1 }
  0x1f   : > { %p52_p13 = scmp.eq.s32.totalorder %s49_s30, 0  ;;  %p1158_p0 = por %p68_p1, %p67_p11 }
  0x20   : > { %p1162_p2 = por %p205_p12, %p61_p8  ;;  %p211_p4 = scmp.eq.s32.totalorder %s700_s19, 1 }
  0x21   : > { %s1167_s10 = scalar_select %p52_p13, %s1030_s23, %s54_s28  }
  0x22   : > { %p1169_p5 = por %p211_p4, %p67_p11  ;;  %p757_p7 = scmp.lt.s32.totalorder %s1042_s26, 2 }
  0x23   : > { %1290 = sst [smem:[#allocation23_spill]] %s1167_s10  ;;  %s265_s12 = sand.u32 1, %s1030_s23  }
  0x24   : > { %s1291_s11 = scalar_select %p1169_p5, 1, 0 }
  0x25   : > { %s706_s13 = sshll.u32 %s1038_s25, 3  ;;  %s705_s14 = sshll.u32 %s265_s12, 3 }
  0x26   : > { %1292 = sst [smem:[#allocation24_spill]] %s1291_s11  ;;  %s274_s17 = scalar_lea.hbm %s1268_s0, %s706_s13 }
  0x27   : > { %s276_s18 = sshll.u32 %s274_s17, 4  ;;  %s269_s30 = scalar_lea.vmem [#allocation6], %s705_s14  ;;  %s277_s18 = int_to_ptr.hbm [resolvable:$true] %s276_s18 }
  0x28   : > { %s278_s2 = sshll.u32 %s269_s30, 4  ;;  %p745_p8 = pnand %p757_p7, %p1147_p10  ;;  %s279_s2 = int_to_ptr.vmem [resolvable:$true] %s278_s2 }
  0x29   : > { %s294_s4 = scalar_lea.hbm %s1269_s1, %s706_s13  ;;  %s285_s20 = sand.u32 1, %s1042_s26  }
  0x2a   : > { %s266_s10 = scalar_lea.sflag [#allocation7], %s265_s12  ;;  %s296_s25 = sshll.u32 %s294_s4, 4  ;;  %s297_s25 = int_to_ptr.hbm [resolvable:$true] %s296_s25 }
  0x2b   : > { %747 = dma.hbm_to_vmem [thread:$0]  (!%p745_p8), %s277_s18, 128, %s279_s2, %s266_s10  }
  0x2c   : > { %s289_s23 = scalar_lea.vmem [#allocation9], %s705_s14  ;;  %s286_s15 = scalar_lea.sflag [#allocation10], %s285_s20 }
  0x2d   : > { %s298_s11 = sshll.u32 %s289_s23, 4  ;;  %307 = sbr.rel (%p1127_p3) target bundleno = 800 (0x320), region = 44  ;;  %s299_s11 = int_to_ptr.vmem [resolvable:$true] %s298_s11 }
  0x2e   : > { %750 = dma.hbm_to_vmem [thread:$0]  (!%p745_p8), %s297_s25, 128, %s299_s11, %s286_s15  }
  0x2f   : > { %s1188_s29 = sand.u32 (!%p1127_p3), 1, %s1026_s22  }
  0x30   : > { %s1191_s13 = sshll.u32 (!%p1127_p3), %s1188_s29, 3  ;;  %s310_s2 = scalar_lea.sflag (!%p1127_p3), [#allocation7], %s1188_s29 }
  0x31   : > { %s313_s4 = scalar_lea.vmem (!%p1127_p3), [#allocation6], %s1191_s13 }
  0x32   : > { %1001 = dma.done.wait (%p1158_p0), %s310_s2, 128  }
  0x33   : > { %1003 = vsyncadd (%p1158_p0), %s310_s2, 4294967168  ;;  %s319_s23 = sand.u32 1, %s1119_s27   ;;  %s323_s7 = scalar_lea.vmem [#allocation9], %s1191_s13 }
  0x34   : > { %s320_s25 = scalar_lea.sflag [#allocation10], %s319_s23 }
  0x35   : > { %1005 = dma.done.wait (%p1158_p0), %s320_s25, 128  }
  0x36   : > { %1007 = vsyncadd (%p1158_p0), %s320_s25, 4294967168 }
  0x37   : > { %1009 = dma.done.wait (%p68_p1), [#allocation10], 256  }
  0x38   : > { %1011 = vsyncadd (%p68_p1), [#allocation10], 4294967040 }
  0x39   : > { %1013 = dma.done.wait (%p68_p1), [#allocation13], 512  }
  0x3a   : > { %1015 = vsyncadd (%p68_p1), [#allocation13], 4294966784  ;;  %v412_v0 = vld [vmem:[#allocation12 + $0x10] sm:$0xff]  ;;  %v374_v1 = vld [vmem:[#allocation11 + $0x8] sm:$0xff]  ;;  %vm379_vm0 = vcmask 130048   ;;  %vm405_vm1 = vcmask 7168  }
  0x3b   : > { %v410_v2 = vld [vmem:[#allocation12] sm:$0xff]  ;;  %438 = vmatpush.msra.mxu1 %v412_v0  ;;  %397 = vmatpush.msra.mxu0 %v374_v1  ;;  %v373_v3 = vld [vmem:[#allocation11] sm:$0xff]  ;;  %v413_v14 = vld [vmem:[#allocation12 + $0x18] sm:$0xff]  ;;  %v1050_v16 = vmov -inf   ;;  %vm486_vm2 = vcmask 64512   ;;  %v1051_v19 = vmov 0  }
  0x3c   : > { %v409_v4 = vld [vmem:[%s323_s7] sm:$0xff]  ;;  %v372_v5 = vld [vmem:[%s313_s4] sm:$0xff]  ;;  %458 = vmatpush.msra.mxu2 %v413_v14  ;;  %406 = vst.msk [vmem:[#allocation3] sm:$0xff] %vm405_vm1, %v1050_v16  ;;  %818 = vset.pattern.permute.xlu0 %v1051_v19  ;;  %v1052_v20 = vmov 0.0   ;;  %s720_s11 = sshll.u32 %s1034_s24, 3  ;;  %s367_s17 = scalar_lea.vmem [#allocation14], %s1191_s13 }
  0x3d   : > { %439 = vmatpush.msra.mxu1 %v410_v2  ;;  %398 = vmatpush.msra.mxu0 %v373_v3  ;;  %v414_v6 = vld [vmem:[%s1273_s5] sm:$0x3]  ;;  %v411_v15 = vld [vmem:[#allocation12 + $0x8] sm:$0xff]  ;;  %407 = vst.msk [vmem:[#allocation4] sm:$0xff] %vm405_vm1, %v1052_v20  ;;  %s568_s16 = scalar_lea.hbm %s1274_s6, %s720_s11  ;;  %s570_s18 = sshll.u32 %s367_s17, 4  ;;  %s571_s18 = int_to_ptr.vmem [resolvable:$true] %s570_s18 }
  0x3e   : > { %716 = vmatmul.msk.f32.vlgmr.msra.gmra.mxu1 %vm379_vm0, %v409_v4  ;;  %715 = vmatmul.msk.f32.vlgmr.msra.gmra.mxu0 %vm379_vm0, %v372_v5  ;;  %v821_v7 = vld [vmem:[%s1271_s3] ss:$0 sm:$0xff]  ;;  %v416_v8 = vperm.slane %v414_v6, 0  ;;  %v417_v25 = vperm.slane %v414_v6, 1  ;;  %s572_s30 = sshll.u32 %s568_s16, 4  ;;  %s557_s19 = scalar_lea.sflag [#allocation8], %s1188_s29  ;;  %s573_s30 = int_to_ptr.hbm [resolvable:$true] %s572_s30 }
  0x3f   : > { %459 = vmatpush.msra.mxu2 %v411_v15  ;;  %819 = vset.pattern.permute.xlu1 %v1051_v19  ;;  %s962_s28 = sshra.s32 %s573_s30, 4  ;;  %s968_s13 = scalar_lea.hbm %s1274_s6, 16  ;;  %s963_s28 = int_to_ptr.hbm [resolvable:$true] %s962_s28 }
  0x40   : > { %717 = vmatmul.msk.f32.vlgmr.msra.gmra.mxu2 %vm379_vm0, %v409_v4  ;;  %820 = vset.pattern.permute.xlu2 %v1051_v19  ;;  %s964_s24 = scalar_lea.hbm %s963_s28, 8  ;;  %p969_p10 = scmp.lt.s32.totalorder %s963_s28, %s1274_s6 }
  0x41   : > { %p965_p1 = scmp.ne.s32.totalorder %s963_s28, %s964_s24  ;;  %p970_p11 = scmp.lt.s32.totalorder %s968_s13, %s964_s24 }
  0x43   : > { %v485_v21 = vld [vmem:[#allocation3] sm:$0xff]  ;;  %p966_p3 = pnand %p965_p1, %p1162_p2  ;;  %p971_p12 = por %p970_p11, %p969_p10 }
  0x44   : > { %v502_v35 = vld [vmem:[#allocation4] sm:$0xff] }
  0x45   : > { %p967_p9 = pneg %p966_p3 }
  0x47   : > { %p972_p13 = pnand %p971_p12, %p967_p9 }
  0xbb   : > { %v441_v9 = vpop.f32.mrf.mxu1  ;;  %v400_v10 = vpop.f32.mrf.mxu0 }
  0xbc   : > { %v401_v11 = vadd.f32 %v821_v7, %v400_v10  ;;  %v442_v12 = vadd.f32 %v441_v9, %v416_v8 }
  0xbe   : > { %v403_v13 = vmul.f32 0.17677669, %v401_v11  ;;  %480 = vmatpush.xpose.msra.mxu3 %v442_v12 }
  0xc1   : > { %481 = vmatmul.f32.vlgmr.msra.gmra.mxu3 %v403_v13 }
  0xc3   : > { %v461_v26 = vpop.f32.mrf.mxu2 }
  0xc4   : > { %v462_v27 = vadd.f32 %v461_v26, %v417_v25 }
  0xc6   : > { %535 = vmatpush.msrb.mxu0 %v462_v27 }
 0x144   : > { %v482_v17 = vpop.f32.mrf.mxu3 }
 0x145   : > { %v487_v18 = vsel %vm486_vm2, %v482_v17, -inf }
 0x146   : > { %488 = vmax.xlane.f32.xlu0 %v487_v18 }
 0x1b9   : > { %v489_v22 = vpop.xlane.xlu0 %488 }
 0x1ba   : > { %v490_v23 = vmax.f32 %v485_v21, %v489_v22 }
 0x1bc   : > { %v491_v24 = vsub.f32 %v485_v21, %v490_v23  ;;  %542 = vst.msk [vmem:[#allocation3] sm:$0xff] %vm405_vm1, %v490_v23  ;;  %496 = vperm.xlu0 %818, %v490_v23  }
 0x1be   : > { %v492_v33 = vmul.f32 1.442695, %v491_v24 }
 0x22e   : > { %v497_v28 = vpop.permute.xlu0 %496 }
 0x22f   : > { %v499_v29 = vsub.f32 %v482_v17, %v497_v28 }
 0x231   : > { %v500_v30 = vmul.f32 1.442695, %v499_v29 }
 0x233   : > { %822 = vpow2.f32 %v500_v30 }
 0x234   : > { %824 = vpow2.f32 %v492_v33 }
 0x239   : > { %v823_v31 = vpop.eup %822 }
 0x23a   : > { %718 = vmatmul.msk.f32.vlgmr.msrb.gmra.mxu0 %vm486_vm2, %v823_v31  ;;  %v504_v32 = vsel %vm486_vm2, %v823_v31, 0.0  ;;  %v825_v34 = vpop.eup %824 }
 0x23b   : > { %505 = vadd.xlane.f32.xlu1 %v504_v32  ;;  %v503_v36 = vmul.f32 %v825_v34, %v502_v35 }
 0x254   : > { %513 = vperm.xlu1 %819, %v825_v34  }
 0x2ae   : > { %v506_v37 = vpop.xlane.xlu1 %505 }
 0x2af   : > { %v507_v38 = vadd.f32 %v506_v37, %v503_v36 }
 0x2b1   : > { %509 = vst.msk [vmem:[#allocation4] sm:$0xff] %vm405_vm1, %v507_v38 }
 0x2b7   : > { %v537_v43 = vpop.f32.mrf.mxu0 }
 0x2b8   : > { %v546_v39 = vld [vmem:[#allocation4] sm:$0xff] }
 0x2b9   : > { %826 = vrcp.f32 %v546_v39 }
 0x2bf   : > { %v827_v40 = vpop.eup %826 }
 0x2c0   : > { %551 = vperm.xlu2 %820, %v827_v40  }
 0x2c6   : > { %v514_v41 = vpop.permute.xlu1 %513 }
 0x2c7   : > { %v516_v42 = vmul.f32 0.0, %v514_v41 }
 0x2c9   : > { %v540_v44 = vadd.f32 %v537_v43, %v516_v42 }
 0x31a   : > { %v552_v45 = vpop.permute.xlu2 %551 }
 0x31b   : > { %v554_v46 = vmul.f32 %v552_v45, %v540_v44 }
 0x31d   : > { %555 = vst [vmem:[%s367_s17] sm:$0xff] %v554_v46 }
 0x31e   : > { %975 = shalt.err (!%p972_p13)
}
 0x31f   : > { %735 = dma.vmem_to_hbm [thread:$0]  (%p1162_p2), %s571_s18, 128, %s573_s30, %s557_s19  }
 0x320 PF: > { %s584_s25 = sand.u32 1, %s1022_s21   ;;  %p752_p0 = pnand %p704_p6, %p1169_p5 }
 0x321   : > { %s585_s7 = scalar_lea.sflag [#allocation8], %s584_s25 }
 0x322   : > { %p753_p4 = pneg %p752_p0 }
 0x324   : > { %1017 = dma.done.wait (%p753_p4), %s585_s7, 128  }
 0x325   : > { %1019 = vsyncadd (%p753_p4), %s585_s7, 4294967168  ;;  %s26_s26 = sadd.s32 1, %s1042_s26   ;;  %s1294_s20 = sld [smem:[#allocation20_spill]] }
 0x326   : > { %p23_p7 = scmp.ge.s32.totalorder %s26_s26, 4   ;;  %s1295_s23 = sld [smem:[#allocation23_spill]] }
 0x327   : > { %s1296_s24 = sld [smem:[#allocation21_spill]]  ;;  %s1298_s21 = smov %s1026_s22 }
 0x328   : > { %s1297_s25 = sld [smem:[#allocation22_spill]]  ;;  %25 = sbr.rel (!%p23_p7) target bundleno = 12 (0xc), region = 118 }
 0x32b   : > { %s1299_s22 = smov %s1294_s20 }
 0x32d   :  { %591 = vsyncpa [#allocation7], 1 }
 0x32e   :  { %593 = vsyncpa [#allocation7 + $0x1], 1 }
 0x32f   :  { %594 = vsyncpa [#allocation10], 1 }
 0x330   :  { %596 = vsyncpa [#allocation10 + $0x1], 1 }
 0x331   :  { %597 = vsyncpa [#allocation13], 1 }
 0x332   :  { %598 = vsyncpa [#allocation8], 1 }
 0x333   :  { %600 = vsyncpa [#allocation8 + $0x1], 1 }

</bundles_post_ra>
